<compile_context>
chip_gen: v6e
topology: v6e:2x2x1
jax: 0.10.0
libtpu: 0.0.40
codegen_flags: <defaults>
</compile_context>

<pallas_src>
import jax
import jax.numpy as jnp
from jax.experimental import pallas as pl
from jax.experimental.pallas import tpu as pltpu

K_IN = 784   # 1 * 28 * 28 (nn.Flatten)
H = 256


def _leaky_relu(x, slope=0.01):
    return jnp.where(x > 0, x, slope * x)


def _cdiv(a, b):
    return (a + b - 1) // b


def discriminator_kernel(x_ref, w1_ref, b1_ref, w2_ref, b2_ref, w3_ref, b3_ref, o_ref):
    # x_ref: (tile, 784) f32 tile of the flattened batch; cast to bf16 in VMEM.
    x = x_ref[...].astype(jnp.bfloat16)

    # Linear(784, 256) + LeakyReLU(0.01): bf16 operands, f32 accumulation on the MXU.
    h1 = jnp.dot(x, w1_ref[...], preferred_element_type=jnp.float32) + b1_ref[...]
    h1 = _leaky_relu(h1)

    # Linear(256, 256) + LeakyReLU(0.01)
    h2 = jnp.dot(h1.astype(jnp.bfloat16), w2_ref[...],
                 preferred_element_type=jnp.float32) + b2_ref[...]
    h2 = _leaky_relu(h2)

    # Linear(256, 1) as a VPU multiply + lane reduction (full f32), stored lane-major
    # so the writeback is 4 B/row instead of a 512 B/row padded slab.
    logits = jnp.sum(h2 * w3_ref[...], axis=-1) + b3_ref[0, 0]      # (tile,) f32
    o_ref[...] = logits[None, :].astype(o_ref.dtype)                # (1, tile)


def discriminator_forward(x_nchw, params, *, tile_b=1024):
    """x_nchw: (B, 1, 28, 28) float32 -> (B, 1) float32."""
    w1, b1, w2, b2, w3, b3 = params
    B = x_nchw.shape[0]

    # nn.Flatten: contiguous reshape, no data movement.  Kernel reads f32 directly.
    x2d = x_nchw.reshape(B, K_IN)

    # Small, one-time weight preparation (resident in VMEM across all grid steps).
    w1_bf = w1.astype(jnp.bfloat16)                     # (784, 256)
    w2_bf = w2.astype(jnp.bfloat16)                     # (256, 256)
    b1_f = b1.reshape(1, H).astype(jnp.float32)
    b2_f = b2.reshape(1, H).astype(jnp.float32)
    w3_row = w3.reshape(1, H).astype(jnp.float32)       # last-layer weight as a row
    b3_s = b3.reshape(1, 1).astype(jnp.float32)         # scalar, lives in SMEM

    # Batch tiling: one full-array block for small batches, otherwise big (mult-of-8)
    # tiles with a partial tail block (no padding of x in HBM).
    if B <= tile_b:
        tile = B
    else:
        tile = max(8, (tile_b // 8) * 8)
    num_tiles = _cdiv(B, tile)
    grid = (num_tiles,)

    in_specs = [
        pl.BlockSpec((tile, K_IN), lambda i: (i, 0)),           # x tile (f32)
        pl.BlockSpec((K_IN, H), lambda i: (0, 0)),              # W1 (bf16, resident)
        pl.BlockSpec((1, H), lambda i: (0, 0)),                 # b1
        pl.BlockSpec((H, H), lambda i: (0, 0)),                 # W2 (bf16, resident)
        pl.BlockSpec((1, H), lambda i: (0, 0)),                 # b2
        pl.BlockSpec((1, H), lambda i: (0, 0)),                 # w3 row (f32)
        pl.BlockSpec(memory_space=pltpu.MemorySpace.SMEM),      # b3 scalar
    ]
    # Lane-major output: one (1, tile) row of logits per grid step.
    out_specs = pl.BlockSpec((1, tile), lambda i: (i, 0))

    out2d = pl.pallas_call(
        discriminator_kernel,
        out_shape=jax.ShapeDtypeStruct((num_tiles, tile), jnp.float32),
        grid=grid,
        in_specs=in_specs,
        out_specs=out_specs,
        compiler_params=pltpu.CompilerParams(
            dimension_semantics=("parallel",),
            vmem_limit_bytes=32 * 1024 * 1024,
        ),
    )(x2d, w1_bf, b1_f, w2_bf, b2_f, w3_row, b3_s)

    # Drop tail-block garbage (rows past B of the last partial tile) and restore (B, 1).
    return out2d.reshape(-1)[:B].reshape(B, 1)


def init_params(key):
    """Deterministic synthetic init matching nn.Linear shapes (stored transposed: (in, out))."""
    k1, k2, k3, k4, k5, k6 = jax.random.split(key, 6)
    w1 = jax.random.uniform(k1, (K_IN, H), jnp.float32, -0.03, 0.03)
    b1 = jax.random.uniform(k2, (1, H), jnp.float32, -0.03, 0.03)
    w2 = jax.random.uniform(k3, (H, H), jnp.float32, -0.06, 0.06)
    b2 = jax.random.uniform(k4, (1, H), jnp.float32, -0.06, 0.06)
    w3 = jax.random.uniform(k5, (H, 1), jnp.float32, -0.06, 0.06)
    b3 = jax.random.uniform(k6, (1, 1), jnp.float32, -0.06, 0.06)
    return (w1, b1, w2, b2, w3, b3)


def reference_forward(x_nchw, params):
    """Pure f32 JAX reference of the PyTorch module."""
    w1, b1, w2, b2, w3, b3 = params
    x = x_nchw.reshape(x_nchw.shape[0], K_IN)
    h1 = _leaky_relu(x @ w1 + b1)
    h2 = _leaky_relu(h1 @ w2 + b2)
    return h2 @ w3 + b3


if __name__ == "__main__":
    key = jax.random.PRNGKey(0)
    kx, kp = jax.random.split(key)

    # MNIST-like input: (B, 1, 28, 28), NCHW.
    B = 16
    x = jax.random.normal(kx, (B, 1, 28, 28), jnp.float32)
    params = init_params(kp)

    out = discriminator_forward(x, params)
    out = jax.block_until_ready(out)

    ref = reference_forward(x, params)
    assert out.shape == (B, 1)
    # Layers 1-2 use bf16 operands (f32 MXU accumulation); layer 3 is full f32.
    assert jnp.allclose(out, ref, atol=2e-2, rtol=2e-2), "mismatch vs JAX reference"

    print("KERNEL_OK")
</pallas_src>

<mosaic_0001>
module attributes {stable_mosaic.version = 11 : i64} {
  func.func @discriminator_kernel(%arg0: i32, %arg1: memref<16x784xf32, #tpu.memory_space<vmem>>, %arg2: memref<784x256xbf16, #tpu.memory_space<vmem>>, %arg3: memref<1x256xf32, #tpu.memory_space<vmem>>, %arg4: memref<256x256xbf16, #tpu.memory_space<vmem>>, %arg5: memref<1x256xf32, #tpu.memory_space<vmem>>, %arg6: memref<1x256xf32, #tpu.memory_space<vmem>>, %arg7: memref<1x1xf32, #tpu.memory_space<smem>>, %arg8: memref<1x16xf32, #tpu.memory_space<vmem>>) attributes {dimension_semantics = [#tpu.dimension_semantics<parallel>], iteration_bounds = array<i64: 1>, scalar_prefetch = 0 : i64, scratch_operands = 0 : i64, tpu.core_type = #tpu.core_type<tc>, window_params = [{transform_indices = @transform_0, window_bounds = array<i64: 16, 784>}, {pipeline_mode = #tpu.pipeline_mode<synchronous>, transform_indices = @transform_1, window_bounds = array<i64: 784, 256>}, {pipeline_mode = #tpu.pipeline_mode<synchronous>, transform_indices = @transform_2, window_bounds = array<i64: 1, 256>}, {pipeline_mode = #tpu.pipeline_mode<synchronous>, transform_indices = @transform_3, window_bounds = array<i64: 256, 256>}, {pipeline_mode = #tpu.pipeline_mode<synchronous>, transform_indices = @transform_4, window_bounds = array<i64: 1, 256>}, {pipeline_mode = #tpu.pipeline_mode<synchronous>, transform_indices = @transform_5, window_bounds = array<i64: 1, 256>}, {transform_indices = @transform_6, window_bounds = array<i64: 1, 1>}, {transform_indices = @transform_7, window_bounds = array<i64: 1, 16>}]} {
    %c0 = arith.constant 0 : index
    %c0_0 = arith.constant 0 : index
    %0 = vector.load %arg1[%c0, %c0_0] : memref<16x784xf32, #tpu.memory_space<vmem>>, vector<16x784xf32>
    %1 = arith.truncf %0 : vector<16x784xf32> to vector<16x784xbf16>
    %c0_1 = arith.constant 0 : index
    %c0_2 = arith.constant 0 : index
    %2 = vector.load %arg2[%c0_1, %c0_2] : memref<784x256xbf16, #tpu.memory_space<vmem>>, vector<784x256xbf16>
    %cst = arith.constant dense<0.000000e+00> : vector<16x256xf32>
    %3 = tpu.matmul %1, %2, %cst {dimension_numbers = #tpu.dot_dimension_numbers<[1], [0], [0], [1], [0, 0, 1, 1], [], []>} : vector<16x784xbf16>, vector<784x256xbf16>, vector<16x256xf32> -> vector<16x256xf32>
    %c0_3 = arith.constant 0 : index
    %c0_4 = arith.constant 0 : index
    %4 = vector.load %arg3[%c0_3, %c0_4] : memref<1x256xf32, #tpu.memory_space<vmem>>, vector<1x256xf32>
    %5 = vector.broadcast %4 : vector<1x256xf32> to vector<16x256xf32>
    %6 = arith.addf %3, %5 : vector<16x256xf32>
    %cst_5 = arith.constant 0.000000e+00 : f32
    %7 = vector.broadcast %cst_5 : f32 to vector<16x256xf32>
    %8 = arith.cmpf ogt, %6, %7 : vector<16x256xf32>
    %cst_6 = arith.constant 0.00999999977 : f32
    %9 = vector.broadcast %cst_6 : f32 to vector<16x256xf32>
    %10 = arith.mulf %9, %6 : vector<16x256xf32>
    %11 = arith.select %8, %6, %10 : vector<16x256xi1>, vector<16x256xf32>
    %12 = arith.truncf %11 : vector<16x256xf32> to vector<16x256xbf16>
    %c0_7 = arith.constant 0 : index
    %c0_8 = arith.constant 0 : index
    %13 = vector.load %arg4[%c0_7, %c0_8] : memref<256x256xbf16, #tpu.memory_space<vmem>>, vector<256x256xbf16>
    %cst_9 = arith.constant dense<0.000000e+00> : vector<16x256xf32>
    %14 = tpu.matmul %12, %13, %cst_9 {dimension_numbers = #tpu.dot_dimension_numbers<[1], [0], [0], [1], [0, 0, 1, 1], [], []>} : vector<16x256xbf16>, vector<256x256xbf16>, vector<16x256xf32> -> vector<16x256xf32>
    %c0_10 = arith.constant 0 : index
    %c0_11 = arith.constant 0 : index
    %15 = vector.load %arg5[%c0_10, %c0_11] : memref<1x256xf32, #tpu.memory_space<vmem>>, vector<1x256xf32>
    %16 = vector.broadcast %15 : vector<1x256xf32> to vector<16x256xf32>
    %17 = arith.addf %14, %16 : vector<16x256xf32>
    %cst_12 = arith.constant 0.000000e+00 : f32
    %18 = vector.broadcast %cst_12 : f32 to vector<16x256xf32>
    %19 = arith.cmpf ogt, %17, %18 : vector<16x256xf32>
    %cst_13 = arith.constant 0.00999999977 : f32
    %20 = vector.broadcast %cst_13 : f32 to vector<16x256xf32>
    %21 = arith.mulf %20, %17 : vector<16x256xf32>
    %22 = arith.select %19, %17, %21 : vector<16x256xi1>, vector<16x256xf32>
    %c0_14 = arith.constant 0 : index
    %c0_15 = arith.constant 0 : index
    %23 = vector.load %arg6[%c0_14, %c0_15] : memref<1x256xf32, #tpu.memory_space<vmem>>, vector<1x256xf32>
    %24 = vector.broadcast %23 : vector<1x256xf32> to vector<16x256xf32>
    %25 = arith.mulf %22, %24 : vector<16x256xf32>
    %cst_16 = arith.constant dense<0.000000e+00> : vector<16xf32>
    %26 = vector.multi_reduction <add>, %25, %cst_16 [1] : vector<16x256xf32> to vector<16xf32>
    %c0_17 = arith.constant 0 : index
    %c0_18 = arith.constant 0 : index
    %27 = memref.load %arg7[%c0_17, %c0_18] : memref<1x1xf32, #tpu.memory_space<smem>>
    %28 = vector.broadcast %27 : f32 to vector<16xf32>
    %29 = arith.addf %26, %28 : vector<16xf32>
    %30 = vector.shape_cast %29 : vector<16xf32> to vector<1x16xf32>
    %c0_19 = arith.constant 0 : index
    %c0_20 = arith.constant 0 : index
    %31 = vector.load %arg8[%c0_19, %c0_20] : memref<1x16xf32, #tpu.memory_space<vmem>>, vector<1x16xf32>
    tpu.vector_store %arg8[%c0_19, %c0_20], %30 {strides = array<i32>} : memref<1x16xf32, #tpu.memory_space<vmem>>, vector<1x16xf32>,
    return
  }
  func.func @transform_0(%arg0: i32) -> (i32, i32) {
    %c0_i32 = arith.constant 0 : i32
    %c0_i32_0 = arith.constant 0 : i32
    return %arg0, %c0_i32 : i32, i32
  }
  func.func @transform_1(%arg0: i32) -> (i32, i32) {
    %c0_i32 = arith.constant 0 : i32
    %c0_i32_0 = arith.constant 0 : i32
    %c0_i32_1 = arith.constant 0 : i32
    return %c0_i32, %c0_i32_0 : i32, i32
  }
  func.func @transform_2(%arg0: i32) -> (i32, i32) {
    %c0_i32 = arith.constant 0 : i32
    %c0_i32_0 = arith.constant 0 : i32
    %c0_i32_1 = arith.constant 0 : i32
    return %c0_i32, %c0_i32_0 : i32, i32
  }
  func.func @transform_3(%arg0: i32) -> (i32, i32) {
    %c0_i32 = arith.constant 0 : i32
    %c0_i32_0 = arith.constant 0 : i32
    %c0_i32_1 = arith.constant 0 : i32
    return %c0_i32, %c0_i32_0 : i32, i32
  }
  func.func @transform_4(%arg0: i32) -> (i32, i32) {
    %c0_i32 = arith.constant 0 : i32
    %c0_i32_0 = arith.constant 0 : i32
    %c0_i32_1 = arith.constant 0 : i32
    return %c0_i32, %c0_i32_0 : i32, i32
  }
  func.func @transform_5(%arg0: i32) -> (i32, i32) {
    %c0_i32 = arith.constant 0 : i32
    %c0_i32_0 = arith.constant 0 : i32
    %c0_i32_1 = arith.constant 0 : i32
    return %c0_i32, %c0_i32_0 : i32, i32
  }
  func.func @transform_6(%arg0: i32) -> (i32, i32) {
    %c0_i32 = arith.constant 0 : i32
    %c0_i32_0 = arith.constant 0 : i32
    %c0_i32_1 = arith.constant 0 : i32
    return %c0_i32, %c0_i32_0 : i32, i32
  }
  func.func @transform_7(%arg0: i32) -> (i32, i32) {
    %c0_i32 = arith.constant 0 : i32
    %c0_i32_0 = arith.constant 0 : i32
    return %arg0, %c0_i32 : i32, i32
  }
}

</mosaic_0001>

<bundles_post_ra>
// kernel: tpu_custom_call.1
= control target key start
LH: loop header
LB: loop body
LE: loop exit
PB: predicated region body
PF: predicated region fallthrough
CT: control target
= control target key end

     0   :  { %13 = vsyncpa [#allocation4], 0  ;;  %s1702_s0 = inlined_call_operand.hbm [shape: f32[16,784], index: 0, kind: input, shape index: {}]   ;;  %s1703_s1 = inlined_call_operand.hbm [shape: bf16[784,256], index: 1, kind: input, shape index: {}]   ;;  %s1704_s2 = inlined_call_operand.vmem [shape: f32[1,256], index: 2, kind: input, shape index: {}]   ;;  %s1705_s3 = inlined_call_operand.hbm [shape: bf16[256,256], index: 3, kind: input, shape index: {}]   ;;  %s1706_s4 = inlined_call_operand.vmem [shape: f32[1,256], index: 4, kind: input, shape index: {}]   ;;  %s1707_s5 = inlined_call_operand.vmem [shape: f32[1,256], index: 5, kind: input, shape index: {}]   ;;  %s1708_s6 = inlined_call_operand.<no memory space> [shape: f32[1,1], index: 6, kind: input, shape index: {}]   ;;  %s1709_s7 = inlined_call_operand.hbm [shape: f32[1,16], index: 7, kind: output, shape index: {}]  }
   0x1   :  { %14 = vsyncpa [#allocation7], 0 }
   0x2   :  { %15 = vsyncpa [#allocation5], 0  ;;  %s1621_s24 = smov [#allocation6]  }
   0x3   :  { %s33_s25 = sshll.u32 %s1621_s24, 4  ;;  %s34_s25 = int_to_ptr.vmem [resolvable:$true] %s33_s25 }
   0x4   :  { %s1543_s26 = scalar_lea.vmem %s34_s25, 12544  ;;  %p1548_p1 = scmp.lt.s32.totalorder %s34_s25, %s34_s25 }
   0x5   :  { %p1544_p0 = scmp.ne.s32.totalorder %s34_s25, %s1543_s26  ;;  %p1549_p2 = scmp.lt.s32.totalorder %s1543_s26, %s1543_s26 }
   0x7   :  { %p1550_p3 = por %p1549_p2, %p1548_p1 }
   0x9   :  { %p1551_p4 = pnand %p1550_p3, %p1544_p0 }
   0xb   :  { %1554 = shalt.err (!%p1551_p4)
}
   0xc   :  { %s1622_s27 = smov 128   ;;  %s1623_s28 = smov 8  }
   0xd   :  { %39 = dma.hbm_to_vmem [thread:$0]  %s1703_s1, 12544, %s34_s25, [#allocation7], %s1622_s27, %s1622_s27, %s1623_s28  }
   0xe   :  { %s1624_s8 = smov [#allocation3]  }
   0xf   :  { %s21_s9 = sshll.u32 %s1624_s8, 4  ;;  %s22_s9 = int_to_ptr.vmem [resolvable:$true] %s21_s9 }
  0x10   :  { %s1563_s10 = scalar_lea.vmem %s22_s9, 1792  ;;  %p1568_p6 = scmp.lt.s32.totalorder %s22_s9, %s22_s9 }
  0x11   :  { %p1564_p5 = scmp.ne.s32.totalorder %s22_s9, %s1563_s10  ;;  %p1569_p7 = scmp.lt.s32.totalorder %s1563_s10, %s1563_s10 }
  0x13   :  { %p1570_p8 = por %p1569_p7, %p1568_p6 }
  0x15   :  { %p1571_p9 = pnand %p1570_p8, %p1564_p5 }
  0x17   :  { %1574 = shalt.err (!%p1571_p9)
}
  0x18   :  { %s1625_s11 = smov 896   ;;  %s1626_s12 = smov 56  }
  0x19   :  { %27 = dma.hbm_to_vmem [thread:$0]  %s1702_s0, 1792, %s22_s9, [#allocation4], %s1625_s11, %s1625_s11, %s1626_s12  }
  0x1a   :  { %s1627_s15 = smov [#allocation8]  }
  0x1b   :  { %s47_s16 = sshll.u32 %s1627_s15, 4  ;;  %s48_s16 = int_to_ptr.vmem [resolvable:$true] %s47_s16 }
  0x1c   :  { %s1583_s1 = scalar_lea.vmem %s48_s16, 4096  ;;  %p1588_p11 = scmp.lt.s32.totalorder %s48_s16, %s48_s16 }
  0x1d   :  { %p1584_p10 = scmp.ne.s32.totalorder %s48_s16, %s1583_s1  ;;  %p1589_p12 = scmp.lt.s32.totalorder %s1583_s1, %s1583_s1 }
  0x1f   :  { %p1590_p13 = por %p1589_p12, %p1588_p11 }
  0x21   :  { %p1591_p0 = pnand %p1590_p13, %p1584_p10 }
  0x23   :  { %1594 = shalt.err (!%p1591_p0)
}
  0x24   :  { %53 = dma.hbm_to_vmem [thread:$0]  %s1705_s3, 4096, %s48_s16, [#allocation7], %s1622_s27, %s1622_s27, %s1623_s28  }
  0x25   :  { %1615 = dma.done.wait [#allocation4], 1792  }
  0x26   :  { %1616 = vsyncadd [#allocation4], 4294965504 }
  0x27   :  { %1617 = dma.done.wait [#allocation7], 16640  }
  0x28   :  { %1618 = vsyncadd [#allocation7], 4294950656  ;;  %v1340_v0 = vld [vmem:[#allocation6 + $0x74] ss:$8 sps:$4 sm:$0xff]   ;;  %v1342_v1 = vld [vmem:[#allocation6 + $0x70] ss:$8 sps:$4 sm:$0xff]  }
  0x29   :  { %695 = vmatprep.subr.bf16.mxu0 %v1340_v0  ;;  %v1343_v2 = vld [vmem:[#allocation6 + $0x174] ss:$8 sps:$4 sm:$0xff]   ;;  %v1345_v3 = vld [vmem:[#allocation6 + $0x170] ss:$8 sps:$4 sm:$0xff]   ;;  %v1346_v4 = vld [vmem:[#allocation6 + $0x64] ss:$8 sps:$4 sm:$0xff]  }
  0x2a   :  { %696 = vmatpush1.bf16.msra.mxu0 %v1342_v1  ;;  %v1348_v5 = vld [vmem:[#allocation6 + $0x60] ss:$8 sps:$4 sm:$0xff]   ;;  %738 = vmatprep.subr.bf16.mxu1 %v1343_v2  ;;  %v1349_v6 = vld [vmem:[#allocation6 + $0x164] ss:$8 sps:$4 sm:$0xff]   ;;  %v1352_v8 = vld [vmem:[#allocation6 + $0x54] ss:$8 sps:$4 sm:$0xff]  }
  0x2b   :  { %739 = vmatpush1.bf16.msra.mxu1 %v1345_v3  ;;  %697 = vmatprep.subr.bf16.mxu0 %v1346_v4  ;;  %v1351_v7 = vld [vmem:[#allocation6 + $0x160] ss:$8 sps:$4 sm:$0xff]   ;;  %v1354_v9 = vld [vmem:[#allocation6 + $0x50] ss:$8 sps:$4 sm:$0xff]   ;;  %v1355_v10 = vld [vmem:[#allocation6 + $0x154] ss:$8 sps:$4 sm:$0xff]  }
  0x2c   :  { %740 = vmatprep.subr.bf16.mxu1 %v1349_v6  ;;  %v1358_v11 = vld [vmem:[#allocation6 + $0x44] ss:$8 sps:$4 sm:$0xff]   ;;  %v1357_v12 = vld [vmem:[#allocation6 + $0x150] ss:$8 sps:$4 sm:$0xff]   ;;  %v1360_v14 = vld [vmem:[#allocation6 + $0x40] ss:$8 sps:$4 sm:$0xff]  }
  0x2d   :  { %v1361_v13 = vld [vmem:[#allocation6 + $0x144] ss:$8 sps:$4 sm:$0xff]   ;;  %v1364_v15 = vld [vmem:[#allocation6 + $0x34] ss:$8 sps:$4 sm:$0xff]   ;;  %v1363_v16 = vld [vmem:[#allocation6 + $0x140] ss:$8 sps:$4 sm:$0xff]  }
  0x2e   :  { %698 = vmatpush1.bf16.msra.mxu0 %v1348_v5  ;;  %v1367_v17 = vld [vmem:[#allocation6 + $0x134] ss:$8 sps:$4 sm:$0xff]   ;;  %v1366_v18 = vld [vmem:[#allocation6 + $0x30] ss:$8 sps:$4 sm:$0xff]   ;;  %v1370_v19 = vld [vmem:[#allocation6 + $0x24] ss:$8 sps:$4 sm:$0xff]  }
  0x2f   :  { %699 = vmatprep.subr.bf16.mxu0 %v1352_v8  ;;  %741 = vmatpush1.bf16.msra.mxu1 %v1351_v7  ;;  %v1369_v20 = vld [vmem:[#allocation6 + $0x130] ss:$8 sps:$4 sm:$0xff]   ;;  %v1373_v21 = vld [vmem:[#allocation6 + $0x124] ss:$8 sps:$4 sm:$0xff]   ;;  %v1372_v22 = vld [vmem:[#allocation6 + $0x20] ss:$8 sps:$4 sm:$0xff]  }
  0x30   :  { %742 = vmatprep.subr.bf16.mxu1 %v1355_v10  ;;  %v1376_v23 = vld [vmem:[#allocation6 + $0x14] ss:$8 sps:$4 sm:$0xff]   ;;  %v1375_v24 = vld [vmem:[#allocation6 + $0x120] ss:$8 sps:$4 sm:$0xff]   ;;  %v1378_v26 = vld [vmem:[#allocation6 + $0x10] ss:$8 sps:$4 sm:$0xff]  }
  0x31   :  { %v1379_v25 = vld [vmem:[#allocation6 + $0x114] ss:$8 sps:$4 sm:$0xff]   ;;  %v1382_v27 = vld [vmem:[#allocation6 + $0x4] ss:$8 sps:$4 sm:$0xff]   ;;  %v1381_v28 = vld [vmem:[#allocation6 + $0x110] ss:$8 sps:$4 sm:$0xff]  }
  0x32   :  { %700 = vmatpush1.bf16.msra.mxu0 %v1354_v9  ;;  %v1385_v29 = vld [vmem:[#allocation6 + $0x104] ss:$8 sps:$4 sm:$0xff]   ;;  %v1384_v30 = vld [vmem:[#allocation6] ss:$8 sps:$4 sm:$0xff]   ;;  %v1388_v31 = vld [vmem:[#allocation6 + $0xf4] ss:$8 sps:$4 sm:$0xff]  }
  0x33   :  { %701 = vmatprep.subr.bf16.mxu0 %v1358_v11  ;;  %743 = vmatpush1.bf16.msra.mxu1 %v1357_v12  ;;  %v1387_v32 = vld [vmem:[#allocation6 + $0x100] ss:$8 sps:$4 sm:$0xff]   ;;  %v1391_v33 = vld [vmem:[#allocation6 + $0x1f4] ss:$8 sps:$4 sm:$0xff]   ;;  %v1390_v34 = vld [vmem:[#allocation6 + $0xf0] ss:$8 sps:$4 sm:$0xff]  }
  0x34   :  { %744 = vmatprep.subr.bf16.mxu1 %v1361_v13  ;;  %v1394_v35 = vld [vmem:[#allocation6 + $0xe4] ss:$8 sps:$4 sm:$0xff]   ;;  %v1393_v36 = vld [vmem:[#allocation6 + $0x1f0] ss:$8 sps:$4 sm:$0xff]   ;;  %v1396_v38 = vld [vmem:[#allocation6 + $0xe0] ss:$8 sps:$4 sm:$0xff]  }
  0x35   :  { %v1397_v37 = vld [vmem:[#allocation6 + $0x1e4] ss:$8 sps:$4 sm:$0xff]   ;;  %v1400_v39 = vld [vmem:[#allocation6 + $0xd4] ss:$8 sps:$4 sm:$0xff]   ;;  %v1399_v40 = vld [vmem:[#allocation6 + $0x1e0] ss:$8 sps:$4 sm:$0xff]  }
  0x36   :  { %702 = vmatpush1.bf16.msra.mxu0 %v1360_v14  ;;  %v1403_v41 = vld [vmem:[#allocation6 + $0x1d4] ss:$8 sps:$4 sm:$0xff]   ;;  %v1402_v42 = vld [vmem:[#allocation6 + $0xd0] ss:$8 sps:$4 sm:$0xff]   ;;  %v1406_v43 = vld [vmem:[#allocation6 + $0xc4] ss:$8 sps:$4 sm:$0xff]  }
  0x37   :  { %703 = vmatprep.subr.bf16.mxu0 %v1364_v15  ;;  %745 = vmatpush1.bf16.msra.mxu1 %v1363_v16  ;;  %v1405_v44 = vld [vmem:[#allocation6 + $0x1d0] ss:$8 sps:$4 sm:$0xff]   ;;  %v1409_v45 = vld [vmem:[#allocation6 + $0x1c4] ss:$8 sps:$4 sm:$0xff]   ;;  %v1408_v48 = vld [vmem:[#allocation6 + $0xc0] ss:$8 sps:$4 sm:$0xff]  }
  0x38   :  { %746 = vmatprep.subr.bf16.mxu1 %v1367_v17  ;;  %v71_v46 = vld [vmem:[#allocation3 + $0x8] sm:$0xff]  ;;  %v78_v47 = vld [vmem:[#allocation3 + $0x40] sm:$0xff]  ;;  %v1411_v51 = vld [vmem:[#allocation6 + $0x1c0] ss:$8 sps:$4 sm:$0xff]   ;;  %vm691_vm0 = vcmask 130048   ;;  %s1629_s22 = smov [#allocation9]  }
  0x39   :  { %v85_v49 = vpack.c.bf16 %v78_v47, %v71_v46  ;;  %v1412_v50 = vld [vmem:[#allocation6 + $0xb4] ss:$8 sps:$4 sm:$0xff]   ;;  %v73_v52 = vld [vmem:[#allocation3 + $0x18] sm:$0xff]  ;;  %v80_v53 = vld [vmem:[#allocation3 + $0x50] sm:$0xff]  ;;  %s1190_s23 = sshll.u32 %s1629_s22, 4  ;;  %vm1179_vm9 = vcmask 130112   ;;  %s1191_s23 = int_to_ptr.vmem [resolvable:$true] %s1190_s23 }
  0x3a   :  { %704 = vmatpush1.bf16.msra.mxu0 %v1366_v18  ;;  %v1415_v54 = vld [vmem:[#allocation6 + $0x1b4] ss:$8 sps:$4 sm:$0xff]   ;;  %v87_v55 = vpack.c.bf16 %v80_v53, %v73_v52  ;;  %v1414_v56 = vld [vmem:[#allocation6 + $0xb0] ss:$8 sps:$4 sm:$0xff]   ;;  %v1418_v57 = vld [vmem:[#allocation6 + $0xa4] ss:$8 sps:$4 sm:$0xff]   ;;  %p1600_p2 = scmp.lt.s32.totalorder %s1191_s23, %s1191_s23 }
  0x3b   :  { %705 = vmatprep.subr.bf16.mxu0 %v1370_v19  ;;  %747 = vmatpush1.bf16.msra.mxu1 %v1369_v20  ;;  %v1417_v58 = vld [vmem:[#allocation6 + $0x1b0] ss:$8 sps:$4 sm:$0xff]   ;;  %v1421_v59 = vld [vmem:[#allocation6 + $0x1a4] ss:$8 sps:$4 sm:$0xff]   ;;  %v1420_v60 = vld [vmem:[#allocation6 + $0xa0] ss:$8 sps:$4 sm:$0xff]  }
  0x3c   :  { %748 = vmatprep.subr.bf16.mxu1 %v1373_v21  ;;  %727 = vmatprep.mubr.bf16.mxu0 %v85_v49  ;;  %v1424_v61 = vld [vmem:[#allocation6 + $0x94] ss:$8 sps:$4 sm:$0xff]   ;;  %v1423_v62 = vld [vmem:[#allocation6 + $0x1a0] ss:$8 sps:$4 sm:$0xff]   ;;  %v1426_v0 = vld [vmem:[#allocation6 + $0x90] ss:$8 sps:$4 sm:$0xff]  }
  0x3d   :  { %770 = vmatprep.mubr.bf16.mxu1 %v87_v55  ;;  %v1427_v63 = vld [vmem:[#allocation6 + $0x194] ss:$8 sps:$4 sm:$0xff]   ;;  %v1429_v1 = vld [vmem:[#allocation6 + $0x190] ss:$8 sps:$4 sm:$0xff]   ;;  %v1430_v2 = vld [vmem:[#allocation6 + $0x84] ss:$8 sps:$4 sm:$0xff]  }
  0x3e   :  { %706 = vmatpush1.bf16.msra.mxu0 %v1372_v22  ;;  %v1432_v3 = vld [vmem:[#allocation6 + $0x80] ss:$8 sps:$4 sm:$0xff]   ;;  %v1433_v4 = vld [vmem:[#allocation6 + $0x184] ss:$8 sps:$4 sm:$0xff]   ;;  %v70_v5 = vld [vmem:[#allocation3] sm:$0xff]  ;;  %v1628_v21 = vmov 0  }
  0x3f   :  { %707 = vmatprep.subr.bf16.mxu0 %v1376_v23  ;;  %749 = vmatpush1.bf16.msra.mxu1 %v1375_v24  ;;  %v1435_v6 = vld [vmem:[#allocation6 + $0x180] ss:$8 sps:$4 sm:$0xff]   ;;  %v1438_v8 = vld [vmem:[#allocation6 + $0x274] ss:$8 sps:$4 sm:$0xff]   ;;  %v1436_v12 = vld [vmem:[#allocation6 + $0x270] ss:$8 sps:$4 sm:$0xff]  }
  0x40   :  { %750 = vmatprep.subr.bf16.mxu1 %v1379_v25  ;;  %v77_v7 = vld [vmem:[#allocation3 + $0x38] sm:$0xff]  ;;  %v72_v9 = vld [vmem:[#allocation3 + $0x10] sm:$0xff]  ;;  %v79_v10 = vld [vmem:[#allocation3 + $0x48] sm:$0xff]  ;;  %vm1182_vm10 = vcmask 122880   ;;  %s1595_s24 = scalar_lea.vmem %s1191_s23, 16 }
  0x41   :  { %v84_v11 = vpack.c.bf16 %v77_v7, %v70_v5  ;;  %v86_v13 = vpack.c.bf16 %v79_v10, %v72_v9  ;;  %v1441_v14 = vld [vmem:[#allocation6 + $0x264] ss:$8 sps:$4 sm:$0xff]   ;;  %v1481_v15 = vld [vmem:[#allocation6 + $0x300] ss:$8 sps:$4 sm:$0xff]   ;;  %v1444_v18 = vld [vmem:[#allocation6 + $0x254] ss:$8 sps:$4 sm:$0xff]   ;;  %p1596_p1 = scmp.ne.s32.totalorder %s1191_s23, %s1595_s24 }
  0x42   :  { %708 = vmatpush1.bf16.msra.mxu0 %v1378_v26  ;;  %v1483_v16 = vld [vmem:[#allocation6 + $0x304] ss:$8 sps:$4 sm:$0xff]   ;;  %v1439_v17 = vld [vmem:[#allocation6 + $0x260] ss:$8 sps:$4 sm:$0xff]   ;;  %v75_v19 = vld [vmem:[#allocation3 + $0x28] sm:$0xff] }
  0x43   :  { %709 = vmatprep.subr.bf16.mxu0 %v1382_v27  ;;  %751 = vmatpush1.bf16.msra.mxu1 %v1381_v28  ;;  %v1442_v20 = vld [vmem:[#allocation6 + $0x250] ss:$8 sps:$4 sm:$0xff]   ;;  %v76_v22 = vld [vmem:[#allocation3 + $0x30] sm:$0xff]  ;;  %v1480_v49 = vld [vmem:[#allocation6 + $0x294] ss:$8 sps:$4 sm:$0xff]  }
  0x44   :  { %752 = vmatprep.subr.bf16.mxu1 %v1385_v29  ;;  %v83_v23 = vld [vmem:[#allocation3 + $0x68] sm:$0xff]  ;;  %v82_v24 = vld [vmem:[#allocation3 + $0x60] sm:$0xff]  ;;  %v1447_v25 = vld [vmem:[#allocation6 + $0x244] ss:$8 sps:$4 sm:$0xff]  }
  0x45   :  { %v89_v26 = vpack.c.bf16 %v82_v24, %v75_v19  ;;  %v90_v27 = vpack.c.bf16 %v83_v23, %v76_v22  ;;  %v1445_v28 = vld [vmem:[#allocation6 + $0x240] ss:$8 sps:$4 sm:$0xff]   ;;  %v1450_v29 = vld [vmem:[#allocation6 + $0x234] ss:$8 sps:$4 sm:$0xff]   ;;  %v1472_v46 = vld [vmem:[#allocation6 + $0x2b0] ss:$8 sps:$4 sm:$0xff]   ;;  %v191_v24 = vlaneseq }
  0x46   :  { %710 = vmatpush1.bf16.msra.mxu0 %v1384_v30  ;;  %v1448_v30 = vld [vmem:[#allocation6 + $0x230] ss:$8 sps:$4 sm:$0xff]   ;;  %v1477_v47 = vld [vmem:[#allocation6 + $0x2a4] ss:$8 sps:$4 sm:$0xff]   ;;  %v1484_v52 = vld [vmem:[#allocation6 + $0x280] ss:$8 sps:$4 sm:$0xff]  }
  0x47   :  { %711 = vmatprep.subr.bf16.mxu0 %v1388_v31  ;;  %753 = vmatpush1.bf16.msra.mxu1 %v1387_v32  ;;  %v1453_v31 = vld [vmem:[#allocation6 + $0x224] ss:$8 sps:$4 sm:$0xff]   ;;  %v1451_v32 = vld [vmem:[#allocation6 + $0x220] ss:$8 sps:$4 sm:$0xff]   ;;  %v74_v53 = vld [vmem:[#allocation3 + $0x20] sm:$0xff] }
  0x48   :  { %754 = vmatprep.subr.bf16.mxu1 %v1391_v33  ;;  %v1456_v33 = vld [vmem:[#allocation6 + $0x214] ss:$8 sps:$4 sm:$0xff]   ;;  %v1505_v5 = vld [vmem:[#allocation8 + $0x10] ss:$8 sps:$4 sm:$0xff]   ;;  %v1508_v7 = vld [vmem:[#allocation8] ss:$8 sps:$4 sm:$0xff]  }
  0x49   :  { %v1511_v9 = vld [vmem:[#allocation8 + $0xf0] ss:$8 sps:$4 sm:$0xff]   ;;  %v1516_v10 = vld [vmem:[#allocation8 + $0xe4] ss:$8 sps:$4 sm:$0xff]   ;;  %v1526_v19 = vld [vmem:[#allocation8 + $0xa0] ss:$8 sps:$4 sm:$0xff]  }
  0x4a   :  { %712 = vmatpush2.bf16.msra.mxu0 %v1390_v34  ;;  %v1454_v34 = vld [vmem:[#allocation6 + $0x210] ss:$8 sps:$4 sm:$0xff]   ;;  %v1534_v23 = vld [vmem:[#allocation8 + $0x84] ss:$8 sps:$4 sm:$0xff]  }
  0x4b   :  { %713 = vmatprep.subr.bf16.mxu0 %v1394_v35  ;;  %755 = vmatpush2.bf16.msra.mxu1 %v1393_v36  ;;  %v1459_v35 = vld [vmem:[#allocation6 + $0x204] ss:$8 sps:$4 sm:$0xff]   ;;  %v1457_v36 = vld [vmem:[#allocation6 + $0x200] ss:$8 sps:$4 sm:$0xff]   ;;  %v1532_v22 = vld [vmem:[#allocation8 + $0x80] ss:$8 sps:$4 sm:$0xff]  }
  0x4c   :  { %756 = vmatprep.subr.bf16.mxu1 %v1397_v37  ;;  %v1462_v37 = vld [vmem:[#allocation6 + $0x2f4] ss:$8 sps:$4 sm:$0xff]  }
  0x4e   :  { %714 = vmatpush2.bf16.msra.mxu0 %v1396_v38  ;;  %v1460_v38 = vld [vmem:[#allocation6 + $0x2f0] ss:$8 sps:$4 sm:$0xff]  }
  0x4f   :  { %715 = vmatprep.subr.bf16.mxu0 %v1400_v39  ;;  %757 = vmatpush2.bf16.msra.mxu1 %v1399_v40  ;;  %v1465_v39 = vld [vmem:[#allocation6 + $0x2e4] ss:$8 sps:$4 sm:$0xff]   ;;  %v1463_v40 = vld [vmem:[#allocation6 + $0x2e0] ss:$8 sps:$4 sm:$0xff]  }
  0x50   :  { %758 = vmatprep.subr.bf16.mxu1 %v1403_v41  ;;  %v1468_v41 = vld [vmem:[#allocation6 + $0x2d4] ss:$8 sps:$4 sm:$0xff]  }
  0x52   :  { %716 = vmatpush2.bf16.msra.mxu0 %v1402_v42  ;;  %v1466_v42 = vld [vmem:[#allocation6 + $0x2d0] ss:$8 sps:$4 sm:$0xff]  }
  0x53   :  { %717 = vmatprep.subr.bf16.mxu0 %v1406_v43  ;;  %759 = vmatpush2.bf16.msra.mxu1 %v1405_v44  ;;  %v1471_v43 = vld [vmem:[#allocation6 + $0x2c4] ss:$8 sps:$4 sm:$0xff]   ;;  %v1469_v44 = vld [vmem:[#allocation6 + $0x2c0] ss:$8 sps:$4 sm:$0xff]  }
  0x54   :  { %760 = vmatprep.subr.bf16.mxu1 %v1409_v45  ;;  %v1474_v45 = vld [vmem:[#allocation6 + $0x2b4] ss:$8 sps:$4 sm:$0xff]  }
  0x56   :  { %718 = vmatpush2.bf16.msra.mxu0 %v1408_v48  ;;  %v1475_v48 = vld [vmem:[#allocation6 + $0x2a0] ss:$8 sps:$4 sm:$0xff]  }
  0x57   :  { %719 = vmatprep.subr.bf16.mxu0 %v1412_v50  ;;  %761 = vmatpush2.bf16.msra.mxu1 %v1411_v51  ;;  %v1478_v50 = vld [vmem:[#allocation6 + $0x290] ss:$8 sps:$4 sm:$0xff]   ;;  %v1486_v51 = vld [vmem:[#allocation6 + $0x284] ss:$8 sps:$4 sm:$0xff]  }
  0x58   :  { %762 = vmatprep.subr.bf16.mxu1 %v1415_v54  ;;  %v81_v54 = vld [vmem:[#allocation3 + $0x58] sm:$0xff] }
  0x59   :  { %v88_v55 = vpack.c.bf16 %v81_v54, %v74_v53 }
  0x5a   :  { %720 = vmatpush2.bf16.msra.mxu0 %v1414_v56  ;;  %v1487_v56 = vld [vmem:[#allocation8 + $0x70] ss:$8 sps:$4 sm:$0xff]  }
  0x5b   :  { %721 = vmatprep.subr.bf16.mxu0 %v1418_v57  ;;  %763 = vmatpush2.bf16.msra.mxu1 %v1417_v58  ;;  %v1489_v57 = vld [vmem:[#allocation8 + $0x74] ss:$8 sps:$4 sm:$0xff]   ;;  %v1492_v58 = vld [vmem:[#allocation8 + $0x64] ss:$8 sps:$4 sm:$0xff]  }
  0x5c   :  { %764 = vmatprep.subr.bf16.mxu1 %v1421_v59  ;;  %v1490_v59 = vld [vmem:[#allocation8 + $0x60] ss:$8 sps:$4 sm:$0xff]  }
  0x5e   :  { %722 = vmatpush2.bf16.msra.mxu0 %v1420_v60  ;;  %v1495_v60 = vld [vmem:[#allocation8 + $0x54] ss:$8 sps:$4 sm:$0xff]  }
  0x5f   :  { %723 = vmatprep.subr.bf16.mxu0 %v1424_v61  ;;  %765 = vmatpush2.bf16.msra.mxu1 %v1423_v62  ;;  %v1493_v61 = vld [vmem:[#allocation8 + $0x50] ss:$8 sps:$4 sm:$0xff]   ;;  %v1498_v62 = vld [vmem:[#allocation8 + $0x44] ss:$8 sps:$4 sm:$0xff]  }
  0x60   :  { %766 = vmatprep.subr.bf16.mxu1 %v1427_v63  ;;  %v1496_v63 = vld [vmem:[#allocation8 + $0x40] ss:$8 sps:$4 sm:$0xff]  }
  0x62   :  { %724 = vmatpush2.bf16.msra.mxu0 %v1426_v0  ;;  %v1501_v0 = vld [vmem:[#allocation8 + $0x34] ss:$8 sps:$4 sm:$0xff]  }
  0x63   :  { %725 = vmatprep.subr.bf16.mxu0 %v1430_v2  ;;  %767 = vmatpush2.bf16.msra.mxu1 %v1429_v1  ;;  %v1499_v1 = vld [vmem:[#allocation8 + $0x30] ss:$8 sps:$4 sm:$0xff]   ;;  %v1504_v2 = vld [vmem:[#allocation8 + $0x24] ss:$8 sps:$4 sm:$0xff]  }
  0x64   :  { %768 = vmatprep.subr.bf16.mxu1 %v1433_v4  ;;  %v1507_v4 = vld [vmem:[#allocation8 + $0x14] ss:$8 sps:$4 sm:$0xff]  }
  0x66   :  { %726 = vmatpush2.bf16.msra.mxu0 %v1432_v3  ;;  %v1502_v3 = vld [vmem:[#allocation8 + $0x20] ss:$8 sps:$4 sm:$0xff]  }
  0x67   :  { %781 = vmatprep.subr.bf16.mxu0 %v1438_v8  ;;  %769 = vmatpush2.bf16.msra.mxu1 %v1435_v6  ;;  %v1510_v6 = vld [vmem:[#allocation8 + $0x4] ss:$8 sps:$4 sm:$0xff]   ;;  %v1513_v8 = vld [vmem:[#allocation8 + $0xf4] ss:$8 sps:$4 sm:$0xff]  }
  0x68   :  { %838 = vmatprep.subr.bf16.mxu1 %v1483_v16  ;;  %v1525_v16 = vld [vmem:[#allocation8 + $0xb4] ss:$8 sps:$4 sm:$0xff]  }
  0x69   :  { %728 = vmatmul.mubr.bf16.vlgmr.msra.gmra.mxu0 %v84_v11  ;;  %v1514_v11 = vld [vmem:[#allocation8 + $0xe0] ss:$8 sps:$4 sm:$0xff]  }
  0x6a   :  { %782 = vmatpush1.bf16.msra.mxu0 %v1436_v12  ;;  %771 = vmatmul.mubr.bf16.vlgmr.msra.gmra.mxu1 %v86_v13  ;;  %v1519_v12 = vld [vmem:[#allocation8 + $0xd4] ss:$8 sps:$4 sm:$0xff]   ;;  %v1517_v13 = vld [vmem:[#allocation8 + $0xd0] ss:$8 sps:$4 sm:$0xff]  }
  0x6b   :  { %783 = vmatprep.subr.bf16.mxu0 %v1441_v14  ;;  %856 = vmatprep.mubr.bf16.mxu1 %v1628_v21  ;;  %v1522_v14 = vld [vmem:[#allocation8 + $0xc4] ss:$8 sps:$4 sm:$0xff]   ;;  %v1529_v21 = vld [vmem:[#allocation8 + $0x90] ss:$8 sps:$4 sm:$0xff]  }
  0x6c   :  { %839 = vmatpush1.bf16.msra.mxu1 %v1481_v15  ;;  %813 = vmatprep.mubr.bf16.mxu0 %v89_v26  ;;  %v1520_v15 = vld [vmem:[#allocation8 + $0xc0] ss:$8 sps:$4 sm:$0xff]   ;;  %v1680_v26 = vshrl.u32 %v191_v24, 7 }
  0x6d   :  { %1085 = vmatprep.subr.bf16.mxu1 %v1489_v57 }
  0x6e   :  { %784 = vmatpush1.bf16.msra.mxu0 %v1439_v17  ;;  %v1523_v17 = vld [vmem:[#allocation8 + $0xb0] ss:$8 sps:$4 sm:$0xff]  }
  0x6f   :  { %785 = vmatprep.subr.bf16.mxu0 %v1444_v18  ;;  %v1528_v18 = vld [vmem:[#allocation8 + $0xa4] ss:$8 sps:$4 sm:$0xff]  }
  0x72   :  { %786 = vmatpush1.bf16.msra.mxu0 %v1442_v20  ;;  %1298 = vmatmul.mubr.msk.bf16.vlgmr.msra.gmra.mxu1 %vm691_vm0, %v90_v27  ;;  %v1531_v20 = vld [vmem:[#allocation8 + $0x94] ss:$8 sps:$4 sm:$0xff]  }
  0x73   :  { %787 = vmatprep.subr.bf16.mxu0 %v1447_v25  ;;  %1086 = vmatpush1.bf16.msra.mxu1 %v1487_v56 }
  0x74   :  { %1087 = vmatprep.subr.bf16.mxu1 %v1492_v58 }
  0x76   :  { %788 = vmatpush1.bf16.msra.mxu0 %v1445_v28 }
  0x77   :  { %789 = vmatprep.subr.bf16.mxu0 %v1450_v29  ;;  %1088 = vmatpush1.bf16.msra.mxu1 %v1490_v59  ;;  %v193_v29 = vsub.s32 0, %v1680_v26 }
  0x78   :  { %1089 = vmatprep.subr.bf16.mxu1 %v1495_v60 }
  0x7a   :  { %790 = vmatpush1.bf16.msra.mxu0 %v1448_v30  ;;  %v197_v30 = vsub.s32 1, %v1680_v26 }
  0x7b   :  { %791 = vmatprep.subr.bf16.mxu0 %v1453_v31  ;;  %1090 = vmatpush1.bf16.msra.mxu1 %v1493_v61  ;;  %v189_v31 = vld [vmem:[%s1704_s2] sm:$0x3] }
  0x7c   :  { %1091 = vmatprep.subr.bf16.mxu1 %v1498_v62 }
  0x7e   :  { %792 = vmatpush1.bf16.msra.mxu0 %v1451_v32 }
  0x7f   :  { %793 = vmatprep.subr.bf16.mxu0 %v1456_v33  ;;  %1092 = vmatpush1.bf16.msra.mxu1 %v1496_v63 }
  0x80   :  { %1093 = vmatprep.subr.bf16.mxu1 %v1501_v0 }
  0x82   :  { %794 = vmatpush1.bf16.msra.mxu0 %v1454_v34  ;;  %v194_v34 = vrot.slane %v189_v31, %v193_v29 }
  0x83   :  { %795 = vmatprep.subr.bf16.mxu0 %v1459_v35  ;;  %1094 = vmatpush1.bf16.msra.mxu1 %v1499_v1  ;;  %v198_v35 = vrot.slane %v189_v31, %v197_v30 }
  0x84   :  { %1095 = vmatprep.subr.bf16.mxu1 %v1504_v2 }
  0x86   :  { %796 = vmatpush1.bf16.msra.mxu0 %v1457_v36 }
  0x87   :  { %797 = vmatprep.subr.bf16.mxu0 %v1462_v37  ;;  %1096 = vmatpush1.bf16.msra.mxu1 %v1502_v3 }
  0x88   :  { %1097 = vmatprep.subr.bf16.mxu1 %v1507_v4 }
  0x8a   :  { %798 = vmatpush2.bf16.msra.mxu0 %v1460_v38 }
  0x8b   :  { %799 = vmatprep.subr.bf16.mxu0 %v1465_v39  ;;  %1098 = vmatpush1.bf16.msra.mxu1 %v1505_v5 }
  0x8c   :  { %1099 = vmatprep.subr.bf16.mxu1 %v1510_v6 }
  0x8e   :  { %800 = vmatpush2.bf16.msra.mxu0 %v1463_v40 }
  0x8f   :  { %801 = vmatprep.subr.bf16.mxu0 %v1468_v41  ;;  %1100 = vmatpush1.bf16.msra.mxu1 %v1508_v7 }
  0x90   :  { %1101 = vmatprep.subr.bf16.mxu1 %v1513_v8 }
  0x92   :  { %802 = vmatpush2.bf16.msra.mxu0 %v1466_v42 }
  0x93   :  { %803 = vmatprep.subr.bf16.mxu0 %v1471_v43  ;;  %1102 = vmatpush2.bf16.msra.mxu1 %v1511_v9  ;;  %v913_v9 = vld [vmem:[%s1706_s4] sm:$0x3] }
  0x94   :  { %1103 = vmatprep.subr.bf16.mxu1 %v1516_v10  ;;  %v918_v10 = vrot.slane %v913_v9, %v193_v29 }
  0x96   :  { %804 = vmatpush2.bf16.msra.mxu0 %v1469_v44 }
  0x97   :  { %805 = vmatprep.subr.bf16.mxu0 %v1474_v45  ;;  %1104 = vmatpush2.bf16.msra.mxu1 %v1514_v11  ;;  %v922_v11 = vrot.slane %v913_v9, %v197_v30 }
  0x98   :  { %1105 = vmatprep.subr.bf16.mxu1 %v1519_v12 }
  0x9a   :  { %806 = vmatpush2.bf16.msra.mxu0 %v1472_v46 }
  0x9b   :  { %807 = vmatprep.subr.bf16.mxu0 %v1477_v47  ;;  %1106 = vmatpush2.bf16.msra.mxu1 %v1517_v13 }
  0x9c   :  { %1107 = vmatprep.subr.bf16.mxu1 %v1522_v14  ;;  %v1140_v14 = vld [vmem:[%s1707_s5] sm:$0x3] }
  0x9e   :  { %808 = vmatpush2.bf16.msra.mxu0 %v1475_v48 }
  0x9f   :  { %809 = vmatprep.subr.bf16.mxu0 %v1480_v49  ;;  %1108 = vmatpush2.bf16.msra.mxu1 %v1520_v15 }
  0xa0   :  { %1109 = vmatprep.subr.bf16.mxu1 %v1525_v16 }
  0xa2   :  { %810 = vmatpush2.bf16.msra.mxu0 %v1478_v50 }
  0xa3   :  { %811 = vmatprep.subr.bf16.mxu0 %v1486_v51  ;;  %1110 = vmatpush2.bf16.msra.mxu1 %v1523_v17 }
  0xa4   :  { %1111 = vmatprep.subr.bf16.mxu1 %v1528_v18 }
  0xa6   :  { %812 = vmatpush2.bf16.msra.mxu0 %v1484_v52 }
  0xa7   :  { %1112 = vmatpush2.bf16.msra.mxu1 %v1526_v19  ;;  %v1145_v19 = vrot.slane %v1140_v14, %v193_v29 }
  0xa8   :  { %1113 = vmatprep.subr.bf16.mxu1 %v1531_v20  ;;  %v1149_v20 = vrot.slane %v1140_v14, %v197_v30 }
  0xa9   :  { %814 = vmatmul.mubr.bf16.vlgmr.msra.gmra.mxu0 %v88_v55 }
  0xab   :  { %1114 = vmatpush2.bf16.msra.mxu1 %v1529_v21 }
  0xac   :  { %1115 = vmatprep.subr.bf16.mxu1 %v1534_v23 }
  0xaf   :  { %1116 = vmatpush2.bf16.msra.mxu1 %v1532_v22 }
 0x129   :  { %v729_v27 = vpop.f32.mrf.mxu0 }
 0x12a   :  { %v772_v25 = vpop.f32.mrf.mxu1  ;;  %v730_v38 = vadd.f32 %v729_v27, %v194_v34 }
 0x12b   :  { %v731_v32 = vpop.f32.mrf.mxu0 }
 0x12c   :  { %v774_v28 = vpop.f32.mrf.mxu1  ;;  %v732_v39 = vadd.f32 %v731_v32, %v198_v35  ;;  %v773_v44 = vadd.f32 %v772_v25, %v730_v38 }
 0x12d   :  { %v733_v36 = vpop.f32.mrf.mxu0 }
 0x12e   :  { %v776_v33 = vpop.f32.mrf.mxu1  ;;  %v734_v42 = vadd.f32 %v733_v36, %v194_v34  ;;  %v775_v45 = vadd.f32 %v774_v28, %v732_v39  ;;  %v1169_v39 = vand.u32 127, %v191_v24 }
 0x12f   :  { %v735_v41 = vpop.f32.mrf.mxu0 }
 0x130   :  { %v778_v37 = vpop.f32.mrf.mxu1  ;;  %v736_v47 = vadd.f32 %v735_v41, %v198_v35  ;;  %v777_v49 = vadd.f32 %v776_v33, %v734_v42  ;;  %v1163_v41 = vstv %s1708_s6  ;;  %s1599_s6 = scalar_lea.vmem %s1191_s23, 32 }
 0x131   :  { %p1601_p3 = scmp.lt.s32.totalorder %s1599_s6, %s1595_s24 }
 0x132   :  { %v858_v40 = vpop.f32.mrf.mxu1  ;;  %v779_v55 = vadd.f32 %v778_v37, %v736_v47 }
 0x133   :  { %p1602_p4 = por %p1601_p3, %p1600_p2 }
 0x134   :  { %v860_v46 = vpop.f32.mrf.mxu1 }
 0x135   :  { %p1603_p5 = pnand %p1602_p4, %p1596_p1 }
 0x136   :  { %v862_v53 = vpop.f32.mrf.mxu1 }
 0x138   :  { %v864_v61 = vpop.f32.mrf.mxu1 }
 0x169   :  { %v815_v43 = vpop.f32.mrf.mxu0 }
 0x16a   :  { %v816_v50 = vadd.f32 %v815_v43, %v773_v44  ;;  %v1172_v43 = vsub.s32 %v1169_v39, %v1680_v26 }
 0x16b   :  { %v817_v48 = vpop.f32.mrf.mxu0 }
 0x16c   :  { %v818_v51 = vadd.f32 %v817_v48, %v775_v45  ;;  %v859_v58 = vadd.f32 %v858_v40, %v816_v50  ;;  %v1174_v40 = vadd.s32 4294967288, %v1169_v39 }
 0x16d   :  { %v819_v52 = vpop.f32.mrf.mxu0 }
 0x16e   :  { %v820_v54 = vadd.f32 %v819_v52, %v777_v49  ;;  %v861_v56 = vadd.f32 %v860_v46, %v818_v51  ;;  %v871_v1 = vmul.f32 0.01, %v859_v58  ;;  %vm867_vm3 = vcmp.gt.f32.partialorder %v859_v58, 0.0 }
 0x16f   :  { %v821_v57 = vpop.f32.mrf.mxu0  ;;  %v1177_v45 = vsub.s32 %v1174_v40, %v1680_v26 }
 0x170   :  { %v863_v59 = vadd.f32 %v862_v53, %v820_v54  ;;  %v822_v60 = vadd.f32 %v821_v57, %v779_v55  ;;  %v872_v63 = vmul.f32 0.01, %v861_v56  ;;  %vm868_vm2 = vcmp.gt.f32.partialorder %v861_v56, 0.0 }
 0x171   :  { %v875_v6 = vsel %vm867_vm3, %v859_v58, %v871_v1 }
 0x172   :  { %v873_v62 = vmul.f32 0.01, %v863_v59  ;;  %vm869_vm1 = vcmp.gt.f32.partialorder %v863_v59, 0.0  ;;  %v865_v0 = vadd.f32 %v864_v61, %v822_v60  ;;  %v876_v4 = vsel %vm868_vm2, %v861_v56, %v872_v63 }
 0x174   :  { %vm870_vm4 = vcmp.gt.f32.partialorder %v865_v0, 0.0  ;;  %v874_v2 = vmul.f32 0.01, %v865_v0  ;;  %v877_v3 = vsel %vm869_vm1, %v863_v59, %v873_v62 }
 0x175   :  { %v879_v8 = vpack.c.bf16 %v877_v3, %v875_v6 }
 0x176   :  { %v878_v5 = vsel %vm870_vm4, %v865_v0, %v874_v2 }
 0x177   :  { %v880_v7 = vpack.c.bf16 %v878_v5, %v876_v4 }
 0x179   :  { %1117 = vmatprep.mubr.bf16.mxu1 %v880_v7 }
 0x17a   :  { %1118 = vmatmul.mubr.bf16.vlgmr.msra.gmra.mxu1 %v879_v8 }
 0x23a   :  { %v1119_v12 = vpop.f32.mrf.mxu1 }
 0x23b   :  { %v1120_v13 = vadd.f32 %v1119_v12, %v918_v10 }
 0x23c   :  { %v1121_v15 = vpop.f32.mrf.mxu1 }
 0x23d   :  { %vm1128_vm5 = vcmp.gt.f32.partialorder %v1120_v13, 0.0  ;;  %v1132_v16 = vmul.f32 0.01, %v1120_v13  ;;  %v1122_v17 = vadd.f32 %v1121_v15, %v922_v11 }
 0x23e   :  { %v1123_v18 = vpop.f32.mrf.mxu1 }
 0x23f   :  { %vm1129_vm6 = vcmp.gt.f32.partialorder %v1122_v17, 0.0  ;;  %v1133_v21 = vmul.f32 0.01, %v1122_v17  ;;  %v1124_v22 = vadd.f32 %v1123_v18, %v918_v10  ;;  %v1136_v23 = vsel %vm1128_vm5, %v1120_v13, %v1132_v16 }
 0x240   :  { %v1125_v25 = vpop.f32.mrf.mxu1  ;;  %v1152_v32 = vmul.f32 %v1145_v19, %v1136_v23 }
 0x241   :  { %vm1130_vm7 = vcmp.gt.f32.partialorder %v1124_v22, 0.0  ;;  %v1134_v27 = vmul.f32 0.01, %v1124_v22  ;;  %v1126_v28 = vadd.f32 %v1125_v25, %v922_v11  ;;  %v1137_v31 = vsel %vm1129_vm6, %v1122_v17, %v1133_v21 }
 0x242   :  { %v1153_v33 = vmul.f32 %v1149_v20, %v1137_v31 }
 0x243   :  { %vm1131_vm8 = vcmp.gt.f32.partialorder %v1126_v28, 0.0  ;;  %v1135_v34 = vmul.f32 0.01, %v1126_v28  ;;  %v1138_v35 = vsel %vm1130_vm7, %v1124_v22, %v1134_v27 }
 0x244   :  { %v1156_v36 = vadd.f32 %v1153_v33, %v1152_v32  ;;  %v1154_v38 = vmul.f32 %v1145_v19, %v1138_v35 }
 0x245   :  { %v1139_v37 = vsel %vm1131_vm8, %v1126_v28, %v1135_v34 }
 0x246   :  { %1157 = vadd.xlane.f32.xlu0 %v1156_v36  ;;  %v1155_v29 = vmul.f32 %v1149_v20, %v1139_v37 }
 0x248   :  { %v1159_v30 = vadd.f32 %v1155_v29, %v1154_v38 }
 0x24a   :  { %1160 = vadd.xlane.f32.xlu0 %v1159_v30 }
 0x2cf   :  { %v1158_v42 = vpop.xlane.xlu0 %1157 }
 0x2d0   :  { %v1164_v44 = vadd.f32 %v1163_v41, %v1158_v42 }
 0x2d2   :  { %v1173_v48 = vrot.slane %v1164_v44, %v1172_v43 }
 0x2d3   :  { %v1161_v46 = vpop.xlane.xlu0 %1160 }
 0x2d4   :  { %v1165_v47 = vadd.f32 %v1163_v41, %v1161_v46 }
 0x2d6   :  { %v1178_v49 = vrot.slane %v1165_v47, %v1177_v45 }
 0x2d8   :  { %v1180_v24 = vsel %vm1179_vm9, %v1178_v49, %v1173_v48 }
 0x2d9   :  { %1183 = vst.msk [vmem:[#allocation9] sm:$0x1] %vm1182_vm10, %v1180_v24 }
 0x2da   :  { %1606 = shalt.err (!%p1603_p5)
}
 0x2db   :  { %1193 = dma.vmem_to_hbm [thread:$0]  %s1191_s23, 16, %s1709_s7, [#allocation5]  }
 0x2dc   :  { %1619 = dma.done.wait [#allocation5], 16  }
 0x2dd   :  { %1620 = vsyncadd [#allocation5], 4294967280 }
 0x2de   :  { %1197 = vsyncpa [#allocation4], 1 }
 0x2df   :  { %1198 = vsyncpa [#allocation7], 1 }
 0x2e0   :  { %1199 = vsyncpa [#allocation5], 1 }

</bundles_post_ra>
